<compile_context>
chip_gen: v6e
topology: v6e:2x2x1
jax: 0.10.0
libtpu: 0.0.40
codegen_flags: <defaults>
</compile_context>

<pallas_src>
import math
import functools

import jax
import jax.numpy as jnp
from jax.experimental import pallas as pl
from jax.experimental.pallas import tpu as pltpu


def _round_up(x, m):
    return ((x + m - 1) // m) * m


# ----------------------------------------------------------------------------
# Kernel 1: all transformer blocks + final LayerNorm
# ----------------------------------------------------------------------------
def transformer_layers_kernel(
    x_ref,                       # (rows, D)     f32   rows = B_tile * L
    wqkv_ref, bqkv_ref,          # (1, D, 3D) bf16, (1, 1, 3D) f32
    wo_ref, bo_ref,              # (1, D, D)  bf16, (1, 1, D)  f32
    w1_ref, b1_ref,              # (1, D, 4D) bf16, (1, 1, 4D) f32
    w2_ref, b2_ref,              # (1, 4D, D) bf16, (1, 1, D)  f32
    ln_g_ref, ln_b_ref,          # (1, D) f32
    o_ref,                       # (rows, D) bf16  final LayerNorm'ed activation
    x_vmem,                      # VMEM (rows, D) f32  residual stream
    ctx_vmem,                    # VMEM (rows, D) f32  per-head attention context
    *, n_heads, seq_len,
):
    layer = pl.program_id(1)
    n_layers = pl.num_programs(1)
    rows, D = x_vmem.shape
    H, L = n_heads, seq_len
    Hd = D // H
    Bt = rows // L

    @pl.when(layer == 0)
    def _():
        x_vmem[...] = x_ref[...].astype(jnp.float32)

    x = x_vmem[...]

    # ---- fused Q/K/V projection (attention scale folded into Q weights) ----
    qkv = jnp.dot(x.astype(jnp.bfloat16), wqkv_ref[0],
                  preferred_element_type=jnp.float32) + bqkv_ref[0]   # (rows, 3D)

    # ---- causal multi-head attention (batched over sequences in the tile) ----
    row_i = jax.lax.broadcasted_iota(jnp.int32, (L, L), 0)
    col_i = jax.lax.broadcasted_iota(jnp.int32, (L, L), 1)
    neg_mask = jnp.where(row_i >= col_i, 0.0, -1e30).astype(jnp.float32)

    # Static unroll over heads only (H is small); batch handled by batched
    # einsums.  TODO(synk): for long L switch to flash-style KV tiling.
    for h in range(H):
        qh = qkv[:, h * Hd:(h + 1) * Hd].reshape(Bt, L, Hd).astype(jnp.bfloat16)
        kh = qkv[:, D + h * Hd:D + (h + 1) * Hd].reshape(Bt, L, Hd).astype(jnp.bfloat16)
        vh = qkv[:, 2 * D + h * Hd:2 * D + (h + 1) * Hd].reshape(Bt, L, Hd).astype(jnp.bfloat16)
        s = jnp.einsum('bqd,bkd->bqk', qh, kh,
                       preferred_element_type=jnp.float32) + neg_mask[None]
        m = jnp.max(s, axis=-1, keepdims=True)
        p = jnp.exp(s - m)
        p = p * pl.reciprocal(jnp.sum(p, axis=-1, keepdims=True), approx=True)
        yh = jnp.einsum('bqk,bkd->bqd', p.astype(jnp.bfloat16), vh,
                        preferred_element_type=jnp.float32)           # (Bt, L, Hd)
        ctx_vmem[:, h * Hd:(h + 1) * Hd] = yh.reshape(rows, Hd)

    # one K=D output projection over the whole context slab (no per-head GEMMs)
    attn = jnp.dot(ctx_vmem[...].astype(jnp.bfloat16), wo_ref[0],
                   preferred_element_type=jnp.float32) + bo_ref[0]
    x = x + attn                                           # residual 1

    # ---- MLP: Linear -> SiLU -> Linear ----
    h1 = jnp.dot(x.astype(jnp.bfloat16), w1_ref[0],
                 preferred_element_type=jnp.float32) + b1_ref[0]
    h1 = h1 * jax.nn.sigmoid(h1)                           # SiLU (f32)
    mlp = jnp.dot(h1.astype(jnp.bfloat16), w2_ref[0],
                  preferred_element_type=jnp.float32) + b2_ref[0]
    x = x + mlp                                            # residual 2

    x_vmem[...] = x

    @pl.when(layer == n_layers - 1)
    def _():
        mu = jnp.mean(x, axis=-1, keepdims=True)
        var = jnp.mean((x - mu) ** 2, axis=-1, keepdims=True)
        xn = (x - mu) * jax.lax.rsqrt(var + 1e-5)
        o_ref[...] = (xn * ln_g_ref[...] + ln_b_ref[...]).astype(o_ref.dtype)


# ----------------------------------------------------------------------------
# Kernel 2: vocab projection, tiled over the (128-padded) vocab lanes
# ----------------------------------------------------------------------------
def vocab_head_kernel(xn_ref, wout_ref, bout_ref, o_ref):
    o_ref[...] = (jnp.dot(xn_ref[...], wout_ref[...],
                          preferred_element_type=jnp.float32)
                  + bout_ref[...]).astype(o_ref.dtype)


# ----------------------------------------------------------------------------
# pallas_call wrappers
# ----------------------------------------------------------------------------
def run_transformer_layers(x2d, params, *, n_heads, n_layers, seq_len, batch_tiles):
    BL, D = x2d.shape
    rows = BL // batch_tiles

    wmap = lambda b, l: (l, 0, 0)      # per-layer weight block
    xmap = lambda b, l: (b, 0)         # per-batch-tile activation block
    cmap = lambda b, l: (0, 0)         # shared (LayerNorm) params

    in_specs = [
        pl.BlockSpec((rows, D), xmap),
        pl.BlockSpec((1, D, 3 * D), wmap), pl.BlockSpec((1, 1, 3 * D), wmap),
        pl.BlockSpec((1, D, D), wmap),     pl.BlockSpec((1, 1, D), wmap),
        pl.BlockSpec((1, D, 4 * D), wmap), pl.BlockSpec((1, 1, 4 * D), wmap),
        pl.BlockSpec((1, 4 * D, D), wmap), pl.BlockSpec((1, 1, D), wmap),
        pl.BlockSpec((1, D), cmap),        pl.BlockSpec((1, D), cmap),
    ]
    out_spec = pl.BlockSpec((rows, D), xmap)

    # Explicit scoped-VMEM limit from the per-step working set
    # (double-buffered per-layer weights + activations + score scratch).
    w_bytes = 12 * D * D * 2 + 9 * D * 4
    act_bytes = rows * D * (4 + 4 + 2 + 4) + rows * 3 * D * 4 + rows * 4 * D * 4
    sc_bytes = 3 * (rows // seq_len) * seq_len * seq_len * 4
    est = 2 * (w_bytes + rows * D * 4) + act_bytes + sc_bytes
    vmem_limit = int(min(96 * 2 ** 20, max(32 * 2 ** 20, 2 * est)))

    kernel = functools.partial(transformer_layers_kernel,
                               n_heads=n_heads, seq_len=seq_len)
    return pl.pallas_call(
        kernel,
        out_shape=jax.ShapeDtypeStruct((BL, D), jnp.bfloat16),
        grid_spec=pltpu.PrefetchScalarGridSpec(
            num_scalar_prefetch=0,
            grid=(batch_tiles, n_layers),
            in_specs=in_specs,
            out_specs=out_spec,
            scratch_shapes=[pltpu.VMEM((rows, D), jnp.float32),
                            pltpu.VMEM((rows, D), jnp.float32)],
        ),
        compiler_params=pltpu.CompilerParams(
            dimension_semantics=("parallel", "arbitrary"),
            vmem_limit_bytes=vmem_limit),
    )(x2d,
      params["wqkv"], params["bqkv"], params["wo"], params["bo"],
      params["w1"], params["b1"], params["w2"], params["b2"],
      params["ln_g"], params["ln_b"])


def run_vocab_head(xn, wout, bout, tn):
    BL, D = xn.shape
    Vp = wout.shape[1]
    n_tiles = Vp // tn
    est = 2 * (BL * D * 2 + D * tn * 2 + tn * 4 + BL * tn * 4)
    vmem_limit = int(min(96 * 2 ** 20, max(32 * 2 ** 20, 2 * est)))
    return pl.pallas_call(
        vocab_head_kernel,
        out_shape=jax.ShapeDtypeStruct((BL, Vp), jnp.float32),
        grid_spec=pltpu.PrefetchScalarGridSpec(
            num_scalar_prefetch=0,
            grid=(n_tiles,),
            in_specs=[pl.BlockSpec((BL, D), lambda n: (0, 0)),
                      pl.BlockSpec((D, tn), lambda n: (0, n)),
                      pl.BlockSpec((1, tn), lambda n: (0, n))],
            out_specs=pl.BlockSpec((BL, tn), lambda n: (0, n)),
        ),
        compiler_params=pltpu.CompilerParams(
            dimension_semantics=("parallel",),
            vmem_limit_bytes=vmem_limit),
    )(xn, wout, bout)


# ----------------------------------------------------------------------------
# Parameters: pre-transposed [in, out] weights, fused QKV (Q pre-scaled by
# 1/sqrt(Hd)), per-layer stacking along a leading axis, bf16 matmul weights.
# ----------------------------------------------------------------------------
def _xavier(key, in_dim, out_dim):
    limit = math.sqrt(6.0 / (in_dim + out_dim))
    return jax.random.uniform(key, (in_dim, out_dim), jnp.float32, -limit, limit)


def init_params(key, *, vocab_len, seq_len, embed_dim, n_layers, n_heads):
    D, V = embed_dim, vocab_len
    Hd = D // n_heads
    vp128 = _round_up(V, 128)
    tn = 512 if vp128 >= 512 else vp128         # vocab lane-tile
    Vp = _round_up(V, tn)
    scale = 1.0 / math.sqrt(Hd)

    key, k_tok, k_out = jax.random.split(key, 3)
    tok_limit = math.sqrt(6.0 / (V + D))
    tok_emb = jax.random.uniform(k_tok, (V, D), jnp.float32, -tok_limit, tok_limit)

    wqkv_l, wo_l, w1_l, w2_l = [], [], [], []
    for _ in range(n_layers):
        key, kq, kk, kv, ko, k1, k2 = jax.random.split(key, 7)
        wq = _xavier(kq, D, D) * scale           # fold 1/sqrt(Hd) into Q
        wqkv_l.append(jnp.concatenate(
            [wq, _xavier(kk, D, D), _xavier(kv, D, D)], axis=1))   # (D, 3D)
        wo_l.append(_xavier(ko, D, D))
        w1_l.append(_xavier(k1, D, 4 * D))
        w2_l.append(_xavier(k2, 4 * D, D))

    w_out = jnp.pad(_xavier(k_out, D, V), ((0, 0), (0, Vp - V)))    # (D, Vp)

    return {
        "tok_emb": tok_emb,
        "pos_emb": jnp.zeros((1, seq_len, D), jnp.float32),
        "wqkv": jnp.stack(wqkv_l).astype(jnp.bfloat16),   # (NL, D, 3D)
        "bqkv": jnp.zeros((n_layers, 1, 3 * D), jnp.float32),
        "wo":   jnp.stack(wo_l).astype(jnp.bfloat16),     # (NL, D, D)
        "bo":   jnp.zeros((n_layers, 1, D), jnp.float32),
        "w1":   jnp.stack(w1_l).astype(jnp.bfloat16),     # (NL, D, 4D)
        "b1":   jnp.zeros((n_layers, 1, 4 * D), jnp.float32),
        "w2":   jnp.stack(w2_l).astype(jnp.bfloat16),     # (NL, 4D, D)
        "b2":   jnp.zeros((n_layers, 1, D), jnp.float32),
        "ln_g": jnp.ones((1, D), jnp.float32),
        "ln_b": jnp.zeros((1, D), jnp.float32),
        "wout": w_out.astype(jnp.bfloat16),               # (D, Vp)
        "bout": jnp.zeros((1, Vp), jnp.float32),
        "vocab_tile": tn,
    }


# ----------------------------------------------------------------------------
# Full forward pass
# ----------------------------------------------------------------------------
def _pick_batch_tiles(B, L):
    for t in (2, 1):
        if B % t == 0 and ((B // t) * L) % 8 == 0:
            return t
    return 1


def transformer_forward(tokens, params, *, n_heads, n_layers, vocab_len):
    B, L = tokens.shape
    D = params["tok_emb"].shape[1]
    # Embedding gather + positional embedding; dropout = identity (eval).
    x = params["tok_emb"][tokens] + params["pos_emb"][:, :L, :]
    x2d = x.reshape(B * L, D).astype(jnp.float32)
    bt = _pick_batch_tiles(B, L)
    xn = run_transformer_layers(x2d, params, n_heads=n_heads,
                                n_layers=n_layers, seq_len=L, batch_tiles=bt)
    logits_padded = run_vocab_head(xn, params["wout"], params["bout"],
                                   params["vocab_tile"])
    # TODO(synk): cross-entropy loss branch (target != None) not translated.
    return logits_padded[:, :vocab_len].reshape(B, L, vocab_len)


if __name__ == "__main__":
    VOCAB = 64
    SEQ_LEN = 8
    EMBED_DIM = 32
    N_HEADS = 4
    N_LAYERS = 2
    BATCH = 2

    key = jax.random.PRNGKey(0)
    key, pkey, tkey = jax.random.split(key, 3)
    params = init_params(pkey, vocab_len=VOCAB, seq_len=SEQ_LEN,
                         embed_dim=EMBED_DIM, n_layers=N_LAYERS,
                         n_heads=N_HEADS)
    tokens = jax.random.randint(tkey, (BATCH, SEQ_LEN), 0, VOCAB, jnp.int32)

    logits = transformer_forward(tokens, params, n_heads=N_HEADS,
                                 n_layers=N_LAYERS, vocab_len=VOCAB)
    logits = jax.block_until_ready(logits)
    assert logits.shape == (BATCH, SEQ_LEN, VOCAB)
    assert bool(jnp.all(jnp.isfinite(logits)))
    print("KERNEL_OK")
</pallas_src>

<mosaic_0001>
module attributes {stable_mosaic.version = 11 : i64} {
  func.func @transformer_layers_kernel(%arg0: i32, %arg1: i32, %arg2: memref<8x32xf32, #tpu.memory_space<vmem>>, %arg3: memref<1x32x96xbf16, #tpu.memory_space<vmem>>, %arg4: memref<1x1x96xf32, #tpu.memory_space<vmem>>, %arg5: memref<1x32x32xbf16, #tpu.memory_space<vmem>>, %arg6: memref<1x1x32xf32, #tpu.memory_space<vmem>>, %arg7: memref<1x32x128xbf16, #tpu.memory_space<vmem>>, %arg8: memref<1x1x128xf32, #tpu.memory_space<vmem>>, %arg9: memref<1x128x32xbf16, #tpu.memory_space<vmem>>, %arg10: memref<1x1x32xf32, #tpu.memory_space<vmem>>, %arg11: memref<1x32xf32, #tpu.memory_space<vmem>>, %arg12: memref<1x32xf32, #tpu.memory_space<vmem>>, %arg13: memref<8x32xbf16, #tpu.memory_space<vmem>>, %arg14: memref<8x32xf32, #tpu.memory_space<vmem>>, %arg15: memref<8x32xf32, #tpu.memory_space<vmem>>) attributes {dimension_semantics = [#tpu.dimension_semantics<parallel>, #tpu.dimension_semantics<arbitrary>], iteration_bounds = array<i64: 2, 2>, scalar_prefetch = 0 : i64, scratch_operands = 2 : i64, tpu.core_type = #tpu.core_type<tc>, window_params = [{transform_indices = @transform_0, window_bounds = array<i64: 8, 32>}, {transform_indices = @transform_1, window_bounds = array<i64: 1, 32, 96>}, {transform_indices = @transform_2, window_bounds = array<i64: 1, 1, 96>}, {transform_indices = @transform_3, window_bounds = array<i64: 1, 32, 32>}, {transform_indices = @transform_4, window_bounds = array<i64: 1, 1, 32>}, {transform_indices = @transform_5, window_bounds = array<i64: 1, 32, 128>}, {transform_indices = @transform_6, window_bounds = array<i64: 1, 1, 128>}, {transform_indices = @transform_7, window_bounds = array<i64: 1, 128, 32>}, {transform_indices = @transform_8, window_bounds = array<i64: 1, 1, 32>}, {pipeline_mode = #tpu.pipeline_mode<synchronous>, transform_indices = @transform_9, window_bounds = array<i64: 1, 32>}, {pipeline_mode = #tpu.pipeline_mode<synchronous>, transform_indices = @transform_10, window_bounds = array<i64: 1, 32>}, {transform_indices = @transform_11, window_bounds = array<i64: 8, 32>}]} {
    %c0_i32 = arith.constant 0 : i32
    %0 = arith.cmpi eq, %arg1, %c0_i32 : i32
    %1 = arith.extui %0 : i1 to i32
    %c0_i32_0 = arith.constant 0 : i32
    %2 = arith.cmpi ne, %1, %c0_i32_0 : i32
    scf.if %2 {
      %c0_58 = arith.constant 0 : index
      %c0_59 = arith.constant 0 : index
      %159 = vector.load %arg2[%c0_58, %c0_59] : memref<8x32xf32, #tpu.memory_space<vmem>>, vector<8x32xf32>
      %c0_60 = arith.constant 0 : index
      %c0_61 = arith.constant 0 : index
      %160 = vector.load %arg14[%c0_60, %c0_61] : memref<8x32xf32, #tpu.memory_space<vmem>>, vector<8x32xf32>
      tpu.vector_store %arg14[%c0_60, %c0_61], %159 {strides = array<i32>} : memref<8x32xf32, #tpu.memory_space<vmem>>, vector<8x32xf32>,
    } else {
    }
    %c0 = arith.constant 0 : index
    %c0_1 = arith.constant 0 : index
    %3 = vector.load %arg14[%c0, %c0_1] : memref<8x32xf32, #tpu.memory_space<vmem>>, vector<8x32xf32>
    %4 = arith.truncf %3 : vector<8x32xf32> to vector<8x32xbf16>
    %c0_2 = arith.constant 0 : index
    %c0_3 = arith.constant 0 : index
    %c0_4 = arith.constant 0 : index
    %5 = vector.load %arg3[%c0_2, %c0_3, %c0_4] : memref<1x32x96xbf16, #tpu.memory_space<vmem>>, vector<1x32x96xbf16>
    %6 = vector.shape_cast %5 : vector<1x32x96xbf16> to vector<32x96xbf16>
    %cst = arith.constant dense<0.000000e+00> : vector<8x96xf32>
    %7 = tpu.matmul %4, %6, %cst {dimension_numbers = #tpu.dot_dimension_numbers<[1], [0], [0], [1], [0, 0, 1, 1], [], []>} : vector<8x32xbf16>, vector<32x96xbf16>, vector<8x96xf32> -> vector<8x96xf32>
    %c0_5 = arith.constant 0 : index
    %c0_6 = arith.constant 0 : index
    %c0_7 = arith.constant 0 : index
    %8 = vector.load %arg4[%c0_5, %c0_6, %c0_7] : memref<1x1x96xf32, #tpu.memory_space<vmem>>, vector<1x1x96xf32>
    %9 = vector.shape_cast %8 : vector<1x1x96xf32> to vector<1x96xf32>
    %10 = vector.broadcast %9 : vector<1x96xf32> to vector<8x96xf32>
    %11 = arith.addf %7, %10 : vector<8x96xf32>
    %12 = tpu.iota {dimensions = array<i32: 0>} : vector<8x8xi32>
    %13 = tpu.iota {dimensions = array<i32: 1>} : vector<8x8xi32>
    %14 = arith.cmpi sge, %12, %13 : vector<8x8xi32>
    %cst_8 = arith.constant 0.000000e+00 : f32
    %cst_9 = arith.constant -1.000000e+30 : f32
    %15 = vector.broadcast %cst_8 : f32 to vector<8x8xf32>
    %16 = vector.broadcast %cst_9 : f32 to vector<8x8xf32>
    %17 = arith.select %14, %15, %16 : vector<8x8xi1>, vector<8x8xf32>
    %18 = vector.extract_strided_slice %11 {offsets = [0, 0], sizes = [8, 8], strides = [1, 1]} : vector<8x96xf32> to vector<8x8xf32>
    %19 = vector.shape_cast %18 : vector<8x8xf32> to vector<1x8x8xf32>
    %20 = arith.truncf %19 : vector<1x8x8xf32> to vector<1x8x8xbf16>
    %21 = vector.extract_strided_slice %11 {offsets = [0, 32], sizes = [8, 8], strides = [1, 1]} : vector<8x96xf32> to vector<8x8xf32>
    %22 = vector.shape_cast %21 : vector<8x8xf32> to vector<1x8x8xf32>
    %23 = arith.truncf %22 : vector<1x8x8xf32> to vector<1x8x8xbf16>
    %24 = vector.extract_strided_slice %11 {offsets = [0, 64], sizes = [8, 8], strides = [1, 1]} : vector<8x96xf32> to vector<8x8xf32>
    %25 = vector.shape_cast %24 : vector<8x8xf32> to vector<1x8x8xf32>
    %26 = arith.truncf %25 : vector<1x8x8xf32> to vector<1x8x8xbf16>
    "tpu.trace_start"() <{level = 10 : i32, message = "bqd,bkd->bqk"}> : () -> ()
    %cst_10 = arith.constant dense<0.000000e+00> : vector<1x8x8xf32>
    %27 = tpu.matmul %20, %23, %cst_10 {dimension_numbers = #tpu.dot_dimension_numbers<[2], [2], [1], [1], [0, 0, 0, 1, 1, 1], [0], [0]>} : vector<1x8x8xbf16>, vector<1x8x8xbf16>, vector<1x8x8xf32> -> vector<1x8x8xf32>
    "tpu.trace_stop"() : () -> ()
    %28 = vector.shape_cast %17 : vector<8x8xf32> to vector<1x8x8xf32>
    %29 = arith.addf %27, %28 : vector<1x8x8xf32>
    %cst_11 = arith.constant dense<0xFF800000> : vector<1x8xf32>
    %30 = vector.multi_reduction <maximumf>, %29, %cst_11 [2] : vector<1x8x8xf32> to vector<1x8xf32>
    %31 = vector.shape_cast %30 : vector<1x8xf32> to vector<1x8x1xf32>
    %32 = vector.broadcast %31 : vector<1x8x1xf32> to vector<1x8x8xf32>
    %33 = arith.subf %29, %32 : vector<1x8x8xf32>
    %34 = math.exp %33 : vector<1x8x8xf32>
    %cst_12 = arith.constant dense<0.000000e+00> : vector<1x8xf32>
    %35 = vector.multi_reduction <add>, %34, %cst_12 [2] : vector<1x8x8xf32> to vector<1x8xf32>
    %36 = vector.shape_cast %35 : vector<1x8xf32> to vector<1x8x1xf32>
    %37 = tpu.reciprocal %36 {approx = true} : vector<1x8x1xf32> -> vector<1x8x1xf32>
    %38 = vector.broadcast %37 : vector<1x8x1xf32> to vector<1x8x8xf32>
    %39 = arith.mulf %34, %38 : vector<1x8x8xf32>
    %40 = arith.truncf %39 : vector<1x8x8xf32> to vector<1x8x8xbf16>
    "tpu.trace_start"() <{level = 10 : i32, message = "bqk,bkd->bqd"}> : () -> ()
    %cst_13 = arith.constant dense<0.000000e+00> : vector<1x8x8xf32>
    %41 = tpu.matmul %40, %26, %cst_13 {dimension_numbers = #tpu.dot_dimension_numbers<[2], [1], [1], [2], [0, 0, 0, 1, 1, 2], [0], [0]>} : vector<1x8x8xbf16>, vector<1x8x8xbf16>, vector<1x8x8xf32> -> vector<1x8x8xf32>
    "tpu.trace_stop"() : () -> ()
    %42 = vector.shape_cast %41 : vector<1x8x8xf32> to vector<8x8xf32>
    %c0_14 = arith.constant 0 : index
    %c0_15 = arith.constant 0 : index
    %43 = vector.load %arg15[%c0_14, %c0_15] : memref<8x32xf32, #tpu.memory_space<vmem>>, vector<8x8xf32>
    tpu.vector_store %arg15[%c0_14, %c0_15], %42 {strides = array<i32>} : memref<8x32xf32, #tpu.memory_space<vmem>>, vector<8x8xf32>,
    %44 = vector.extract_strided_slice %11 {offsets = [0, 8], sizes = [8, 8], strides = [1, 1]} : vector<8x96xf32> to vector<8x8xf32>
    %45 = vector.shape_cast %44 : vector<8x8xf32> to vector<1x8x8xf32>
    %46 = arith.truncf %45 : vector<1x8x8xf32> to vector<1x8x8xbf16>
    %47 = vector.extract_strided_slice %11 {offsets = [0, 40], sizes = [8, 8], strides = [1, 1]} : vector<8x96xf32> to vector<8x8xf32>
    %48 = vector.shape_cast %47 : vector<8x8xf32> to vector<1x8x8xf32>
    %49 = arith.truncf %48 : vector<1x8x8xf32> to vector<1x8x8xbf16>
    %50 = vector.extract_strided_slice %11 {offsets = [0, 72], sizes = [8, 8], strides = [1, 1]} : vector<8x96xf32> to vector<8x8xf32>
    %51 = vector.shape_cast %50 : vector<8x8xf32> to vector<1x8x8xf32>
    %52 = arith.truncf %51 : vector<1x8x8xf32> to vector<1x8x8xbf16>
    "tpu.trace_start"() <{level = 10 : i32, message = "bqd,bkd->bqk"}> : () -> ()
    %cst_16 = arith.constant dense<0.000000e+00> : vector<1x8x8xf32>
    %53 = tpu.matmul %46, %49, %cst_16 {dimension_numbers = #tpu.dot_dimension_numbers<[2], [2], [1], [1], [0, 0, 0, 1, 1, 1], [0], [0]>} : vector<1x8x8xbf16>, vector<1x8x8xbf16>, vector<1x8x8xf32> -> vector<1x8x8xf32>
    "tpu.trace_stop"() : () -> ()
    %54 = vector.shape_cast %17 : vector<8x8xf32> to vector<1x8x8xf32>
    %55 = arith.addf %53, %54 : vector<1x8x8xf32>
    %cst_17 = arith.constant dense<0xFF800000> : vector<1x8xf32>
    %56 = vector.multi_reduction <maximumf>, %55, %cst_17 [2] : vector<1x8x8xf32> to vector<1x8xf32>
    %57 = vector.shape_cast %56 : vector<1x8xf32> to vector<1x8x1xf32>
    %58 = vector.broadcast %57 : vector<1x8x1xf32> to vector<1x8x8xf32>
    %59 = arith.subf %55, %58 : vector<1x8x8xf32>
    %60 = math.exp %59 : vector<1x8x8xf32>
    %cst_18 = arith.constant dense<0.000000e+00> : vector<1x8xf32>
    %61 = vector.multi_reduction <add>, %60, %cst_18 [2] : vector<1x8x8xf32> to vector<1x8xf32>
    %62 = vector.shape_cast %61 : vector<1x8xf32> to vector<1x8x1xf32>
    %63 = tpu.reciprocal %62 {approx = true} : vector<1x8x1xf32> -> vector<1x8x1xf32>
    %64 = vector.broadcast %63 : vector<1x8x1xf32> to vector<1x8x8xf32>
    %65 = arith.mulf %60, %64 : vector<1x8x8xf32>
    %66 = arith.truncf %65 : vector<1x8x8xf32> to vector<1x8x8xbf16>
    "tpu.trace_start"() <{level = 10 : i32, message = "bqk,bkd->bqd"}> : () -> ()
    %cst_19 = arith.constant dense<0.000000e+00> : vector<1x8x8xf32>
    %67 = tpu.matmul %66, %52, %cst_19 {dimension_numbers = #tpu.dot_dimension_numbers<[2], [1], [1], [2], [0, 0, 0, 1, 1, 2], [0], [0]>} : vector<1x8x8xbf16>, vector<1x8x8xbf16>, vector<1x8x8xf32> -> vector<1x8x8xf32>
    "tpu.trace_stop"() : () -> ()
    %68 = vector.shape_cast %67 : vector<1x8x8xf32> to vector<8x8xf32>
    %c0_20 = arith.constant 0 : index
    %c8 = arith.constant 8 : index
    %69 = vector.load %arg15[%c0_20, %c8] : memref<8x32xf32, #tpu.memory_space<vmem>>, vector<8x8xf32>
    tpu.vector_store %arg15[%c0_20, %c8], %68 {strides = array<i32>} : memref<8x32xf32, #tpu.memory_space<vmem>>, vector<8x8xf32>,
    %70 = vector.extract_strided_slice %11 {offsets = [0, 16], sizes = [8, 8], strides = [1, 1]} : vector<8x96xf32> to vector<8x8xf32>
    %71 = vector.shape_cast %70 : vector<8x8xf32> to vector<1x8x8xf32>
    %72 = arith.truncf %71 : vector<1x8x8xf32> to vector<1x8x8xbf16>
    %73 = vector.extract_strided_slice %11 {offsets = [0, 48], sizes = [8, 8], strides = [1, 1]} : vector<8x96xf32> to vector<8x8xf32>
    %74 = vector.shape_cast %73 : vector<8x8xf32> to vector<1x8x8xf32>
    %75 = arith.truncf %74 : vector<1x8x8xf32> to vector<1x8x8xbf16>
    %76 = vector.extract_strided_slice %11 {offsets = [0, 80], sizes = [8, 8], strides = [1, 1]} : vector<8x96xf32> to vector<8x8xf32>
    %77 = vector.shape_cast %76 : vector<8x8xf32> to vector<1x8x8xf32>
    %78 = arith.truncf %77 : vector<1x8x8xf32> to vector<1x8x8xbf16>
    "tpu.trace_start"() <{level = 10 : i32, message = "bqd,bkd->bqk"}> : () -> ()
    %cst_21 = arith.constant dense<0.000000e+00> : vector<1x8x8xf32>
    %79 = tpu.matmul %72, %75, %cst_21 {dimension_numbers = #tpu.dot_dimension_numbers<[2], [2], [1], [1], [0, 0, 0, 1, 1, 1], [0], [0]>} : vector<1x8x8xbf16>, vector<1x8x8xbf16>, vector<1x8x8xf32> -> vector<1x8x8xf32>
    "tpu.trace_stop"() : () -> ()
    %80 = vector.shape_cast %17 : vector<8x8xf32> to vector<1x8x8xf32>
    %81 = arith.addf %79, %80 : vector<1x8x8xf32>
    %cst_22 = arith.constant dense<0xFF800000> : vector<1x8xf32>
    %82 = vector.multi_reduction <maximumf>, %81, %cst_22 [2] : vector<1x8x8xf32> to vector<1x8xf32>
    %83 = vector.shape_cast %82 : vector<1x8xf32> to vector<1x8x1xf32>
    %84 = vector.broadcast %83 : vector<1x8x1xf32> to vector<1x8x8xf32>
    %85 = arith.subf %81, %84 : vector<1x8x8xf32>
    %86 = math.exp %85 : vector<1x8x8xf32>
    %cst_23 = arith.constant dense<0.000000e+00> : vector<1x8xf32>
    %87 = vector.multi_reduction <add>, %86, %cst_23 [2] : vector<1x8x8xf32> to vector<1x8xf32>
    %88 = vector.shape_cast %87 : vector<1x8xf32> to vector<1x8x1xf32>
    %89 = tpu.reciprocal %88 {approx = true} : vector<1x8x1xf32> -> vector<1x8x1xf32>
    %90 = vector.broadcast %89 : vector<1x8x1xf32> to vector<1x8x8xf32>
    %91 = arith.mulf %86, %90 : vector<1x8x8xf32>
    %92 = arith.truncf %91 : vector<1x8x8xf32> to vector<1x8x8xbf16>
    "tpu.trace_start"() <{level = 10 : i32, message = "bqk,bkd->bqd"}> : () -> ()
    %cst_24 = arith.constant dense<0.000000e+00> : vector<1x8x8xf32>
    %93 = tpu.matmul %92, %78, %cst_24 {dimension_numbers = #tpu.dot_dimension_numbers<[2], [1], [1], [2], [0, 0, 0, 1, 1, 2], [0], [0]>} : vector<1x8x8xbf16>, vector<1x8x8xbf16>, vector<1x8x8xf32> -> vector<1x8x8xf32>
    "tpu.trace_stop"() : () -> ()
    %94 = vector.shape_cast %93 : vector<1x8x8xf32> to vector<8x8xf32>
    %c0_25 = arith.constant 0 : index
    %c16 = arith.constant 16 : index
    %95 = vector.load %arg15[%c0_25, %c16] : memref<8x32xf32, #tpu.memory_space<vmem>>, vector<8x8xf32>
    tpu.vector_store %arg15[%c0_25, %c16], %94 {strides = array<i32>} : memref<8x32xf32, #tpu.memory_space<vmem>>, vector<8x8xf32>,
    %96 = vector.extract_strided_slice %11 {offsets = [0, 24], sizes = [8, 8], strides = [1, 1]} : vector<8x96xf32> to vector<8x8xf32>
    %97 = vector.shape_cast %96 : vector<8x8xf32> to vector<1x8x8xf32>
    %98 = arith.truncf %97 : vector<1x8x8xf32> to vector<1x8x8xbf16>
    %99 = vector.extract_strided_slice %11 {offsets = [0, 56], sizes = [8, 8], strides = [1, 1]} : vector<8x96xf32> to vector<8x8xf32>
    %100 = vector.shape_cast %99 : vector<8x8xf32> to vector<1x8x8xf32>
    %101 = arith.truncf %100 : vector<1x8x8xf32> to vector<1x8x8xbf16>
    %102 = vector.extract_strided_slice %11 {offsets = [0, 88], sizes = [8, 8], strides = [1, 1]} : vector<8x96xf32> to vector<8x8xf32>
    %103 = vector.shape_cast %102 : vector<8x8xf32> to vector<1x8x8xf32>
    %104 = arith.truncf %103 : vector<1x8x8xf32> to vector<1x8x8xbf16>
    "tpu.trace_start"() <{level = 10 : i32, message = "bqd,bkd->bqk"}> : () -> ()
    %cst_26 = arith.constant dense<0.000000e+00> : vector<1x8x8xf32>
    %105 = tpu.matmul %98, %101, %cst_26 {dimension_numbers = #tpu.dot_dimension_numbers<[2], [2], [1], [1], [0, 0, 0, 1, 1, 1], [0], [0]>} : vector<1x8x8xbf16>, vector<1x8x8xbf16>, vector<1x8x8xf32> -> vector<1x8x8xf32>
    "tpu.trace_stop"() : () -> ()
    %106 = vector.shape_cast %17 : vector<8x8xf32> to vector<1x8x8xf32>
    %107 = arith.addf %105, %106 : vector<1x8x8xf32>
    %cst_27 = arith.constant dense<0xFF800000> : vector<1x8xf32>
    %108 = vector.multi_reduction <maximumf>, %107, %cst_27 [2] : vector<1x8x8xf32> to vector<1x8xf32>
    %109 = vector.shape_cast %108 : vector<1x8xf32> to vector<1x8x1xf32>
    %110 = vector.broadcast %109 : vector<1x8x1xf32> to vector<1x8x8xf32>
    %111 = arith.subf %107, %110 : vector<1x8x8xf32>
    %112 = math.exp %111 : vector<1x8x8xf32>
    %cst_28 = arith.constant dense<0.000000e+00> : vector<1x8xf32>
    %113 = vector.multi_reduction <add>, %112, %cst_28 [2] : vector<1x8x8xf32> to vector<1x8xf32>
    %114 = vector.shape_cast %113 : vector<1x8xf32> to vector<1x8x1xf32>
    %115 = tpu.reciprocal %114 {approx = true} : vector<1x8x1xf32> -> vector<1x8x1xf32>
    %116 = vector.broadcast %115 : vector<1x8x1xf32> to vector<1x8x8xf32>
    %117 = arith.mulf %112, %116 : vector<1x8x8xf32>
    %118 = arith.truncf %117 : vector<1x8x8xf32> to vector<1x8x8xbf16>
    "tpu.trace_start"() <{level = 10 : i32, message = "bqk,bkd->bqd"}> : () -> ()
    %cst_29 = arith.constant dense<0.000000e+00> : vector<1x8x8xf32>
    %119 = tpu.matmul %118, %104, %cst_29 {dimension_numbers = #tpu.dot_dimension_numbers<[2], [1], [1], [2], [0, 0, 0, 1, 1, 2], [0], [0]>} : vector<1x8x8xbf16>, vector<1x8x8xbf16>, vector<1x8x8xf32> -> vector<1x8x8xf32>
    "tpu.trace_stop"() : () -> ()
    %120 = vector.shape_cast %119 : vector<1x8x8xf32> to vector<8x8xf32>
    %c0_30 = arith.constant 0 : index
    %c24 = arith.constant 24 : index
    %121 = vector.load %arg15[%c0_30, %c24] : memref<8x32xf32, #tpu.memory_space<vmem>>, vector<8x8xf32>
    tpu.vector_store %arg15[%c0_30, %c24], %120 {strides = array<i32>} : memref<8x32xf32, #tpu.memory_space<vmem>>, vector<8x8xf32>,
    %c0_31 = arith.constant 0 : index
    %c0_32 = arith.constant 0 : index
    %122 = vector.load %arg15[%c0_31, %c0_32] : memref<8x32xf32, #tpu.memory_space<vmem>>, vector<8x32xf32>
    %123 = arith.truncf %122 : vector<8x32xf32> to vector<8x32xbf16>
    %c0_33 = arith.constant 0 : index
    %c0_34 = arith.constant 0 : index
    %c0_35 = arith.constant 0 : index
    %124 = vector.load %arg5[%c0_33, %c0_34, %c0_35] : memref<1x32x32xbf16, #tpu.memory_space<vmem>>, vector<1x32x32xbf16>
    %125 = vector.shape_cast %124 : vector<1x32x32xbf16> to vector<32x32xbf16>
    %cst_36 = arith.constant dense<0.000000e+00> : vector<8x32xf32>
    %126 = tpu.matmul %123, %125, %cst_36 {dimension_numbers = #tpu.dot_dimension_numbers<[1], [0], [0], [1], [0, 0, 1, 1], [], []>} : vector<8x32xbf16>, vector<32x32xbf16>, vector<8x32xf32> -> vector<8x32xf32>
    %c0_37 = arith.constant 0 : index
    %c0_38 = arith.constant 0 : index
    %c0_39 = arith.constant 0 : index
    %127 = vector.load %arg6[%c0_37, %c0_38, %c0_39] : memref<1x1x32xf32, #tpu.memory_space<vmem>>, vector<1x1x32xf32>
    %128 = vector.shape_cast %127 : vector<1x1x32xf32> to vector<1x32xf32>
    %129 = vector.broadcast %128 : vector<1x32xf32> to vector<8x32xf32>
    %130 = arith.addf %126, %129 : vector<8x32xf32>
    %131 = arith.addf %3, %130 : vector<8x32xf32>
    %132 = arith.truncf %131 : vector<8x32xf32> to vector<8x32xbf16>
    %c0_40 = arith.constant 0 : index
    %c0_41 = arith.constant 0 : index
    %c0_42 = arith.constant 0 : index
    %133 = vector.load %arg7[%c0_40, %c0_41, %c0_42] : memref<1x32x128xbf16, #tpu.memory_space<vmem>>, vector<1x32x128xbf16>
    %134 = vector.shape_cast %133 : vector<1x32x128xbf16> to vector<32x128xbf16>
    %cst_43 = arith.constant dense<0.000000e+00> : vector<8x128xf32>
    %135 = tpu.matmul %132, %134, %cst_43 {dimension_numbers = #tpu.dot_dimension_numbers<[1], [0], [0], [1], [0, 0, 1, 1], [], []>} : vector<8x32xbf16>, vector<32x128xbf16>, vector<8x128xf32> -> vector<8x128xf32>
    %c0_44 = arith.constant 0 : index
    %c0_45 = arith.constant 0 : index
    %c0_46 = arith.constant 0 : index
    %136 = vector.load %arg8[%c0_44, %c0_45, %c0_46] : memref<1x1x128xf32, #tpu.memory_space<vmem>>, vector<1x1x128xf32>
    %137 = vector.shape_cast %136 : vector<1x1x128xf32> to vector<1x128xf32>
    %138 = vector.broadcast %137 : vector<1x128xf32> to vector<8x128xf32>
    %139 = arith.addf %135, %138 : vector<8x128xf32>
    %140 = arith.negf %139 : vector<8x128xf32>
    %141 = math.exp %140 : vector<8x128xf32>
    %cst_47 = arith.constant 1.000000e+00 : f32
    %142 = vector.broadcast %cst_47 : f32 to vector<8x128xf32>
    %143 = arith.addf %142, %141 : vector<8x128xf32>
    %144 = arith.divf %142, %143 : vector<8x128xf32>
    %145 = arith.mulf %139, %144 : vector<8x128xf32>
    %146 = arith.truncf %145 : vector<8x128xf32> to vector<8x128xbf16>
    %c0_48 = arith.constant 0 : index
    %c0_49 = arith.constant 0 : index
    %c0_50 = arith.constant 0 : index
    %147 = vector.load %arg9[%c0_48, %c0_49, %c0_50] : memref<1x128x32xbf16, #tpu.memory_space<vmem>>, vector<1x128x32xbf16>
    %148 = vector.shape_cast %147 : vector<1x128x32xbf16> to vector<128x32xbf16>
    %cst_51 = arith.constant dense<0.000000e+00> : vector<8x32xf32>
    %149 = tpu.matmul %146, %148, %cst_51 {dimension_numbers = #tpu.dot_dimension_numbers<[1], [0], [0], [1], [0, 0, 1, 1], [], []>} : vector<8x128xbf16>, vector<128x32xbf16>, vector<8x32xf32> -> vector<8x32xf32>
    %c0_52 = arith.constant 0 : index
    %c0_53 = arith.constant 0 : index
    %c0_54 = arith.constant 0 : index
    %150 = vector.load %arg10[%c0_52, %c0_53, %c0_54] : memref<1x1x32xf32, #tpu.memory_space<vmem>>, vector<1x1x32xf32>
    %151 = vector.shape_cast %150 : vector<1x1x32xf32> to vector<1x32xf32>
    %152 = vector.broadcast %151 : vector<1x32xf32> to vector<8x32xf32>
    %153 = arith.addf %149, %152 : vector<8x32xf32>
    %154 = arith.addf %131, %153 : vector<8x32xf32>
    %c0_55 = arith.constant 0 : index
    %c0_56 = arith.constant 0 : index
    %155 = vector.load %arg14[%c0_55, %c0_56] : memref<8x32xf32, #tpu.memory_space<vmem>>, vector<8x32xf32>
    tpu.vector_store %arg14[%c0_55, %c0_56], %154 {strides = array<i32>} : memref<8x32xf32, #tpu.memory_space<vmem>>, vector<8x32xf32>,
    %c1_i32 = arith.constant 1 : i32
    %156 = arith.cmpi eq, %arg1, %c1_i32 : i32
    %157 = arith.extui %156 : i1 to i32
    %c0_i32_57 = arith.constant 0 : i32
    %158 = arith.cmpi ne, %157, %c0_i32_57 : i32
    scf.if %158 {
      %cst_58 = arith.constant dense<0.000000e+00> : vector<8xf32>
      %159 = vector.multi_reduction <add>, %154, %cst_58 [1] : vector<8x32xf32> to vector<8xf32>
      %160 = vector.shape_cast %159 : vector<8xf32> to vector<8x1xf32>
      %cst_59 = arith.constant 3.200000e+01 : f32
      %161 = vector.broadcast %cst_59 : f32 to vector<8x1xf32>
      %162 = arith.divf %160, %161 : vector<8x1xf32>
      %163 = vector.broadcast %162 : vector<8x1xf32> to vector<8x32xf32>
      %164 = arith.subf %154, %163 : vector<8x32xf32>
      %165 = arith.mulf %164, %164 : vector<8x32xf32>
      %cst_60 = arith.constant dense<0.000000e+00> : vector<8xf32>
      %166 = vector.multi_reduction <add>, %165, %cst_60 [1] : vector<8x32xf32> to vector<8xf32>
      %167 = vector.shape_cast %166 : vector<8xf32> to vector<8x1xf32>
      %cst_61 = arith.constant 3.200000e+01 : f32
      %168 = vector.broadcast %cst_61 : f32 to vector<8x1xf32>
      %169 = arith.divf %167, %168 : vector<8x1xf32>
      %170 = vector.broadcast %162 : vector<8x1xf32> to vector<8x32xf32>
      %171 = arith.subf %154, %170 : vector<8x32xf32>
      %cst_62 = arith.constant 9.99999974E-6 : f32
      %172 = vector.broadcast %cst_62 : f32 to vector<8x1xf32>
      %173 = arith.addf %169, %172 : vector<8x1xf32>
      %174 = math.rsqrt %173 : vector<8x1xf32>
      %175 = vector.broadcast %174 : vector<8x1xf32> to vector<8x32xf32>
      %176 = arith.mulf %171, %175 : vector<8x32xf32>
      %c0_63 = arith.constant 0 : index
      %c0_64 = arith.constant 0 : index
      %177 = vector.load %arg11[%c0_63, %c0_64] : memref<1x32xf32, #tpu.memory_space<vmem>>, vector<1x32xf32>
      %178 = vector.broadcast %177 : vector<1x32xf32> to vector<8x32xf32>
      %179 = arith.mulf %176, %178 : vector<8x32xf32>
      %c0_65 = arith.constant 0 : index
      %c0_66 = arith.constant 0 : index
      %180 = vector.load %arg12[%c0_65, %c0_66] : memref<1x32xf32, #tpu.memory_space<vmem>>, vector<1x32xf32>
      %181 = vector.broadcast %180 : vector<1x32xf32> to vector<8x32xf32>
      %182 = arith.addf %179, %181 : vector<8x32xf32>
      %183 = arith.truncf %182 : vector<8x32xf32> to vector<8x32xbf16>
      %c0_67 = arith.constant 0 : index
      %c0_68 = arith.constant 0 : index
      %184 = vector.load %arg13[%c0_67, %c0_68] : memref<8x32xbf16, #tpu.memory_space<vmem>>, vector<8x32xbf16>
      tpu.vector_store %arg13[%c0_67, %c0_68], %183 {strides = array<i32>} : memref<8x32xbf16, #tpu.memory_space<vmem>>, vector<8x32xbf16>,
    } else {
    }
    return
  }
  func.func @transform_0(%arg0: i32, %arg1: i32) -> (i32, i32) {
    %c0_i32 = arith.constant 0 : i32
    %c0_i32_0 = arith.constant 0 : i32
    return %arg0, %c0_i32 : i32, i32
  }
  func.func @transform_1(%arg0: i32, %arg1: i32) -> (i32, i32, i32) {
    %c0_i32 = arith.constant 0 : i32
    %c0_i32_0 = arith.constant 0 : i32
    %c0_i32_1 = arith.constant 0 : i32
    return %arg1, %c0_i32, %c0_i32_0 : i32, i32, i32
  }
  func.func @transform_2(%arg0: i32, %arg1: i32) -> (i32, i32, i32) {
    %c0_i32 = arith.constant 0 : i32
    %c0_i32_0 = arith.constant 0 : i32
    %c0_i32_1 = arith.constant 0 : i32
    return %arg1, %c0_i32, %c0_i32_0 : i32, i32, i32
  }
  func.func @transform_3(%arg0: i32, %arg1: i32) -> (i32, i32, i32) {
    %c0_i32 = arith.constant 0 : i32
    %c0_i32_0 = arith.constant 0 : i32
    %c0_i32_1 = arith.constant 0 : i32
    return %arg1, %c0_i32, %c0_i32_0 : i32, i32, i32
  }
  func.func @transform_4(%arg0: i32, %arg1: i32) -> (i32, i32, i32) {
    %c0_i32 = arith.constant 0 : i32
    %c0_i32_0 = arith.constant 0 : i32
    %c0_i32_1 = arith.constant 0 : i32
    return %arg1, %c0_i32, %c0_i32_0 : i32, i32, i32
  }
  func.func @transform_5(%arg0: i32, %arg1: i32) -> (i32, i32, i32) {
    %c0_i32 = arith.constant 0 : i32
    %c0_i32_0 = arith.constant 0 : i32
    %c0_i32_1 = arith.constant 0 : i32
    return %arg1, %c0_i32, %c0_i32_0 : i32, i32, i32
  }
  func.func @transform_6(%arg0: i32, %arg1: i32) -> (i32, i32, i32) {
    %c0_i32 = arith.constant 0 : i32
    %c0_i32_0 = arith.constant 0 : i32
    %c0_i32_1 = arith.constant 0 : i32
    return %arg1, %c0_i32, %c0_i32_0 : i32, i32, i32
  }
  func.func @transform_7(%arg0: i32, %arg1: i32) -> (i32, i32, i32) {
    %c0_i32 = arith.constant 0 : i32
    %c0_i32_0 = arith.constant 0 : i32
    %c0_i32_1 = arith.constant 0 : i32
    return %arg1, %c0_i32, %c0_i32_0 : i32, i32, i32
  }
  func.func @transform_8(%arg0: i32, %arg1: i32) -> (i32, i32, i32) {
    %c0_i32 = arith.constant 0 : i32
    %c0_i32_0 = arith.constant 0 : i32
    %c0_i32_1 = arith.constant 0 : i32
    return %arg1, %c0_i32, %c0_i32_0 : i32, i32, i32
  }
  func.func @transform_9(%arg0: i32, %arg1: i32) -> (i32, i32) {
    %c0_i32 = arith.constant 0 : i32
    %c0_i32_0 = arith.constant 0 : i32
    %c0_i32_1 = arith.constant 0 : i32
    return %c0_i32, %c0_i32_0 : i32, i32
  }
  func.func @transform_10(%arg0: i32, %arg1: i32) -> (i32, i32) {
    %c0_i32 = arith.constant 0 : i32
    %c0_i32_0 = arith.constant 0 : i32
    %c0_i32_1 = arith.constant 0 : i32
    return %c0_i32, %c0_i32_0 : i32, i32
  }
  func.func @transform_11(%arg0: i32, %arg1: i32) -> (i32, i32) {
    %c0_i32 = arith.constant 0 : i32
    %c0_i32_0 = arith.constant 0 : i32
    return %arg0, %c0_i32 : i32, i32
  }
}

</mosaic_0001>

<bundles_post_ra>
// kernel: tpu_custom_call.1
= control target key start
LH: loop header
LB: loop body
LE: loop exit
PB: predicated region body
PF: predicated region fallthrough
CT: control target
= control target key end

     0   :  { %s2321_s0 = inlined_call_operand.vmem [shape: f32[16,32], index: 0, kind: input, shape index: {}]   ;;  %s2322_s1 = inlined_call_operand.vmem [shape: bf16[2,32,96], index: 1, kind: input, shape index: {}]   ;;  %s2323_s2 = inlined_call_operand.vmem [shape: f32[2,1,96], index: 2, kind: input, shape index: {}]   ;;  %s2324_s3 = inlined_call_operand.vmem [shape: bf16[2,32,32], index: 3, kind: input, shape index: {}]   ;;  %s2325_s4 = inlined_call_operand.vmem [shape: f32[2,1,32], index: 4, kind: input, shape index: {}]   ;;  %s2326_s5 = inlined_call_operand.vmem [shape: bf16[2,32,128], index: 5, kind: input, shape index: {}]   ;;  %s2327_s6 = inlined_call_operand.vmem [shape: f32[2,1,128], index: 6, kind: input, shape index: {}]   ;;  %s2328_s7 = inlined_call_operand.vmem [shape: bf16[2,128,32], index: 7, kind: input, shape index: {}]   ;;  %s2329_s8 = inlined_call_operand.vmem [shape: f32[2,1,32], index: 8, kind: input, shape index: {}]   ;;  %s2330_s9 = inlined_call_operand.vmem [shape: f32[1,32], index: 9, kind: input, shape index: {}]   ;;  %s2331_s10 = inlined_call_operand.vmem [shape: f32[1,32], index: 10, kind: input, shape index: {}]   ;;  %s2332_s11 = inlined_call_operand.hbm [shape: bf16[16,32], index: 11, kind: output, shape index: {}]  }
   0x1   :  { %2347 = sst [smem:[#allocation19_spill]] %s2321_s0 }
   0x2   :  { %2348 = sst [smem:[#allocation20_spill]] %s2322_s1 }
   0x3   :  { %2349 = sst [smem:[#allocation21_spill]] %s2324_s3 }
   0x4   :  { %2350 = sst [smem:[#allocation22_spill]] %s2332_s11 }
   0x5   :  { %16 = vsyncpa [#allocation5], 0 }
   0x6   :  { %18 = vsyncpa [#allocation5 + $0x1], 0  ;;  %s2015_s17 = smov 0   ;;  %s2017_s18 = smov 0  }
   0x7   :  { %s2019_s19 = smov 0   ;;  %s2021_s20 = smov 0  }
   0x8   :  { %s2023_s21 = smov 0   ;;  %s2025_s22 = smov 0  }
   0x9   :  { %s2027_s23 = smov 0   ;;  %s2029_s24 = smov 0  }
   0xa LB: > { %2351 = sst [smem:[#allocation7_spill]] %s1907_s17  ;;  %s1536_s25 = sadd.s32 4294967295, %s1935_s24   ;;  %s1935_s24 = sphi %s2029_s24, %s24_s24   ;;  %s1931_s23 = sphi %s2027_s23, %s2384_s23   ;;  %s1927_s22 = sphi %s2025_s22, %s2383_s22   ;;  %s1923_s21 = sphi %s2023_s21, %s2382_s21   ;;  %s1919_s20 = sphi %s2021_s20, %s2381_s20   ;;  %s1915_s19 = sphi %s2019_s19, %s2380_s19   ;;  %s1911_s18 = sphi %s2017_s18, %s2379_s18   ;;  %s1907_s17 = sphi %s2015_s17, %s2378_s17  }
   0xb   : > { %2352 = sst [smem:[#allocation8_spill]] %s1911_s18  ;;  %s1537_s26 = sadd.s32 4294967294, %s1935_s24  }
   0xc   : > { %2353 = sst [smem:[#allocation9_spill]] %s1915_s19  ;;  %s33_s27 = sadd.s32 1, %s1927_s22 }
   0xd   : > { %2354 = sst [smem:[#allocation10_spill]] %s1923_s21  ;;  %p34_p0 = scmp.ge.s32.totalorder %s33_s27, 2 }
   0xe   : > { %2355 = sst [smem:[#allocation11_spill]] %s1927_s22  ;;  %s36_s28 = sadd.s32 1, %s1931_s23 }
   0xf   : > { %2356 = sst [smem:[#allocation12_spill]] %s1931_s23  ;;  %p329_p1 = scmp.ne.s32.totalorder %s1915_s19, %s1911_s18 }
  0x10   : > { %2357 = sst [smem:[#allocation13_spill]] %s1935_s24  ;;  %p330_p2 = scmp.eq.s32.totalorder %s1536_s25, 3 }
  0x11   : > { %s2386_s27 = smov (%p34_p0, %s33_s27), 0  ;;  %s2388_s28 = smov (!%p34_p0, %s36_s28), %s1931_s23 }
  0x12   : > { %2358 = sst [smem:[#allocation14_spill]] %s2386_s27  ;;  %p2064_p3 = por %p330_p2, %p329_p1 }
  0x13   : > { %p335_p4 = scmp.ne.s32.totalorder %s1911_s18, %s1907_s17  ;;  %p38_p5 = scmp.ge.s32.totalorder %s2388_s28, 2 }
  0x14   : > { %s2359_s29 = scalar_select %p2064_p3, 1, 0 }
  0x15   : > { %p336_p6 = scmp.eq.s32.totalorder %s1537_s26, 3  ;;  %p1540_p7 = scmp.ge.s32.totalorder %s1935_s24, 1 }
  0x16   : > { %2360 = sst [smem:[#allocation15_spill]] %s2359_s29  ;;  %p423_p8 = scmp.lt.s32.totalorder %s1935_s24, 5 }
  0x17   : > { %s2390_s28 = smov (%p38_p5, %s2388_s28), 0  ;;  %p2074_p9 = por %p336_p6, %p335_p4 }
  0x18   : > { %2361 = sst [smem:[#allocation16_spill]] %s2390_s28  ;;  %p424_p10 = pnand %p1540_p7, %p423_p8 }
  0x19   : > { %s2362_s30 = scalar_select %p2074_p9, 1, 0 }
  0x1a   : > { %s316_s12 = ssub.s32 %s1931_s23, %s2390_s28  ;;  %s319_s13 = sadd.s32 1, %s1915_s19 }
  0x1b   : > { %2363 = sst [smem:[#allocation17_spill]] %s2362_s30  ;;  %p317_p11 = scmp.eq.s32.totalorder %s316_s12, 0 }
  0x1c   : > { %427 = sbr.rel (%p424_p10) target bundleno = 2228 (0x8b4), region = 64  ;;  %s2336_s15 = sand.u32 (!%p424_p10), 1, %s1911_s18  }
  0x1d   : > { %s2082_s14 = scalar_select %p317_p11, %s1915_s19, %s319_s13  }
  0x1e   : > { %p494_p12 = scmp.lt.s32.totalorder (!%p424_p10), %s1923_s21, 1  ;;  %s2088_s16 = sshll.u32 (!%p424_p10), %s2336_s15, 2 }
  0x1f   : > { %2364 = sst [smem:[#allocation18_spill]] %s2082_s14  ;;  %p498_p13 = scmp.lt.s32.totalorder (!%p424_p10), %s1919_s20, 1 }
  0x20   : > { %s2365_s0 = sld [smem:[#allocation19_spill]] (!%p424_p10)  ;;  %s493_s18 = scalar_lea.vmem (!%p424_p10), [#allocation4], %s2088_s16 }
  0x21   : > { %s495_s25 = scalar_select %p494_p12, %s1923_s21, 1 }
  0x22   : > { %s2093_s26 = scalar_select %p498_p13, %s1919_s20, 1 }
  0x23   : > { %s1542_s12 = sshll.u32 %s495_s25, 3  ;;  %s2366_s1 = sld [smem:[#allocation20_spill]] }
  0x24   : > { %s1589_s23 = sshll.u32 %s2093_s26, 4  ;;  %s2367_s3 = sld [smem:[#allocation21_spill]] }
  0x25   : > { %s513_s21 = scalar_lea.vmem %s2325_s4, %s2093_s26  ;;  %s2118_s13 = scalar_lea.vmem %s2326_s5, %s1589_s23 }
  0x26   : > { %s497_s27 = scalar_lea.vmem %s2365_s0, %s1542_s12  ;;  %s521_s0 = scalar_lea.vmem %s2327_s6, %s2093_s26 }
  0x27   : > { %s1592_s19 = sshll.u32 %s2093_s26, 6  ;;  %s529_s11 = scalar_lea.vmem %s2329_s8, %s2093_s26 }
  0x28   : > { %p1551_p0 = scmp.ne.s32.totalorder %s1919_s20, 0 }
  0x29   : > { %s502_s14 = scalar_lea.vmem %s2366_s1, %s1589_s23 }
  0x2a   : > { %s2109_s29 = scalar_lea.vmem %s2367_s3, %s1589_s23  ;;  %s2132_s3 = scalar_lea.vmem %s2328_s7, %s1592_s19 }
  0x2b   : > { %534 = sbr.rel (%p1551_p0) target bundleno = 50 (0x32), region = 68 }
  0x30   : > { %v535_v0 = vld [vmem:[%s497_s27] sm:$0xff]  ;;  %vm536_vm0 = vcmask 261120  }
  0x31   : > { %537 = vst.msk [vmem:[#allocation2] sm:$0xff] %vm536_vm0, %v535_v0 }
  0x32 PF: > { %v1807_v1 = vld [vmem:[%s502_s14 + $0x8] sm:$0xff]   ;;  %v1937_v2 = vmov 0.0   ;;  %v1808_v3 = vld [vmem:[%s502_s14] sm:$0xff]   ;;  %vm1938_vm1 = vmmov 0   ;;  %vm563_vm2 = vcmask 261120   ;;  %s2368_s23 = scalar_lea.vmem %s2323_s2, %s2093_s26  ;;  %s1939_s27 = smov 120   ;;  %v607_v24 = vlaneseq }
  0x33   : > { %1627 = vmatprep.subr.bf16.mxu0 %v1937_v2  ;;  %1647 = vmatprep.subr.bf16.mxu1 %v1937_v2  ;;  %v1552_v6 = vld [vmem:[%s2368_s23] ss:$0 sm:$0xff]  ;;  %s1940_s14 = smov 96   ;;  %s1941_s25 = smov 80   ;;  %vm617_vm3 = vcmask 64512   ;;  %vm681_vm5 = vcmask 1043456  }
  0x34   : > { %1628 = vmatpush3.bf16.msra.mxu0 %v1807_v1  ;;  %1631 = vmatprep.mubr.msk.bf16.mxu0 %vm1938_vm1, %v1937_v2  ;;  %s1942_s28 = smov 88   ;;  %s1943_s12 = smov 72   ;;  %v608_v25 = vshrl.u32 %v607_v24, 7  ;;  %v610_v26 = vand.u32 127, %v607_v24  ;;  %v1946_v27 = vmov -1e+30  }
  0x35   : > { %1629 = vmatprep.subr.bf16.mxu0 %v1937_v2  ;;  %1649 = vmatprep.mubr.msk.bf16.mxu1 %vm1938_vm1, %v1937_v2  ;;  %s1944_s22 = smov 112   ;;  %s1945_s15 = smov 104   ;;  %vm840_vm6 = vcmask 130112   ;;  %vm956_vm7 = vcmask 195712   ;;  %vm1072_vm8 = vcmask 261312  }
  0x36   : > { %vm611_vm4 = vcmp.ge.s32.totalorder %v608_v25, %v610_v26  ;;  %s1947_s19 = smov 56   ;;  %s1948_s30 = smov 64  }
  0x37   : > { %v612_v28 = vsel %vm611_vm4, 0.0, %v1946_v27  ;;  %s1949_s24 = smov 40   ;;  %s1950_s1 = smov 48  }
  0x38   : > { %v2140_v4 = vld [vmem:[#allocation2] sm:$0xff]  ;;  %1630 = vmatpush3.bf16.msra.mxu0 %v1808_v3  ;;  %s1951_s17 = smov 8   ;;  %s1952_s23 = smov 16  }
  0x39   : > { %v539_v5 = vpack.c.bf16 %v2140_v4, %v2140_v4  ;;  %1635 = vmatprep.subr.bf16.mxu0 %v1937_v2  ;;  %p1582_p1 = scmp.ne.s32.totalorder %s1919_s20, 1 }
  0x3b   : > { %1632 = vmatmul.mubr.msk.bf16.vlgmr.msra.gmra.mxu0 %vm563_vm2, %v539_v5 }
  0x3c   : > { %1637 = vmatprep.mubr.msk.bf16.mxu0 %vm1938_vm1, %v1937_v2 }
  0xfb   : > { %v601_v7 = vpop.f32.mrf.mxu0 }
  0xfc   : > { %v602_v8 = vadd.f32 %v1552_v6, %v601_v7 }
  0xfd   : > { %v1633_v9 = vpop.f32.mrf.mxu0 }
  0xfe   : > { %v2156_v10 = vpack.c.bf16 %v602_v8, %v602_v8 }
  0xff   : > { %v604_v11 = vpop.f32.mrf.mxu0 }
 0x100   : > { %726 = vrot.lane.b32.xlu1 %v2156_v10, %s1939_s27  ;;  %615 = vrot.lane.b32.xlu0 %v2156_v10, %s1940_s14  ;;  %s1953_s27 = smov 24  }
 0x101   : > { %v1634_v12 = vpop.f32.mrf.mxu0 }
 0x104   : > { %844 = vrot.lane.b32.xlu1 %v2156_v10, %s1941_s25  ;;  %728 = vrot.lane.b32.xlu0 %v2156_v10, %s1942_s28 }
 0x108   : > { %960 = vrot.lane.b32.xlu1 %v2156_v10, %s1943_s12  ;;  %842 = vrot.lane.b32.xlu0 %v2156_v10, %s1944_s22 }
 0x10c   : > { %958 = vrot.lane.b32.xlu0 %v2156_v10, %s1945_s15 }
 0x172   : > { %v616_v13 = vpop.permute.xlu0 %615  ;;  %v727_v15 = vpop.permute.xlu1 %726 }
 0x173   : > { %v622_v14 = vsel %vm617_vm3, %v616_v13, 0 }
 0x174   : > { %1636 = vmatpush3.bf16.xpose.msra.mxu0 %v622_v14 }
 0x175   : > { %1641 = vmatprep.subr.bf16.mxu0 %v1937_v2 }
 0x176   : > { %v729_v16 = vpop.permute.xlu0 %728  ;;  %v845_v18 = vpop.permute.xlu1 %844 }
 0x177   : > { %v734_v17 = vsel %vm617_vm3, %v729_v16, 0  ;;  %v850_v19 = vsel %vm617_vm3, %v845_v18, 0 }
 0x178   : > { %1648 = vmatpush3.bf16.xpose.msra.mxu1 %v734_v17 }
 0x179   : > { %1659 = vmatprep.subr.bf16.mxu1 %v1937_v2 }
 0x17a   : > { %v961_v20 = vpop.permute.xlu1 %960  ;;  %v843_v21 = vpop.permute.xlu0 %842 }
 0x17b   : > { %1638 = vmatmul.mubr.msk.bf16.vlgmr.msra.gmra.mxu0 %vm617_vm3, %v2156_v10  ;;  %v966_v22 = vsel %vm617_vm3, %v961_v20, 0 }
 0x17c   : > { %1643 = vmatprep.mubr.msk.bf16.mxu0 %vm1938_vm1, %v1937_v2 }
 0x17e   : > { %v959_v23 = vpop.permute.xlu0 %958 }
 0x17f   : > { %1650 = vmatmul.mubr.msk.bf16.vlgmr.msra.gmra.mxu1 %vm617_vm3, %v727_v15 }
 0x180   : > { %1660 = vmatpush3.bf16.xpose.msra.mxu1 %v850_v19  ;;  %1661 = vmatprep.mubr.msk.bf16.mxu1 %vm1938_vm1, %v1937_v2 }
 0x181   : > { %1671 = vmatprep.subr.bf16.mxu1 %v1937_v2 }
 0x187   : > { %1662 = vmatmul.mubr.msk.bf16.vlgmr.msra.gmra.mxu1 %vm617_vm3, %v843_v21 }
 0x188   : > { %1672 = vmatpush3.bf16.xpose.msra.mxu1 %v966_v22  ;;  %1673 = vmatprep.mubr.msk.bf16.mxu1 %vm1938_vm1, %v1937_v2 }
 0x189   : > { %1683 = vmatprep.subr.bf16.mxu1 %v1937_v2 }
 0x18f   : > { %1674 = vmatmul.mubr.msk.bf16.vlgmr.msra.gmra.mxu1 %vm617_vm3, %v959_v23 }
 0x190   : > { %1687 = vmatprep.mubr.msk.bf16.mxu1 %vm1938_vm1, %v1937_v2 }
 0x23b   : > { %v658_v29 = vpop.f32.mrf.mxu0 }
 0x23c   : > { %v659_v30 = vadd.f32 %v658_v29, %v612_v28 }
 0x23d   : > { %v1639_v31 = vpop.f32.mrf.mxu0 }
 0x23e   : > { %v664_v32 = vsel %vm617_vm3, %v659_v30, -inf }
 0x23f   : > { %v770_v33 = vpop.f32.mrf.mxu1  ;;  %665 = vmax.xlane.f32.xlu1 %v664_v32  ;;  %v661_v34 = vpop.f32.mrf.mxu0 }
 0x240   : > { %v771_v35 = vadd.f32 %v770_v33, %v612_v28 }
 0x241   : > { %v1640_v36 = vpop.f32.mrf.mxu0  ;;  %v1651_v37 = vpop.f32.mrf.mxu1 }
 0x242   : > { %v776_v38 = vsel %vm617_vm3, %v771_v35, -inf }
 0x243   : > { %777 = vmax.xlane.f32.xlu0 %v776_v38  ;;  %v773_v39 = vpop.f32.mrf.mxu1 }
 0x245   : > { %v1652_v40 = vpop.f32.mrf.mxu1 }
 0x247   : > { %v886_v41 = vpop.f32.mrf.mxu1 }
 0x248   : > { %v887_v42 = vadd.f32 %v886_v41, %v612_v28 }
 0x249   : > { %v1663_v43 = vpop.f32.mrf.mxu1 }
 0x24a   : > { %v892_v44 = vsel %vm617_vm3, %v887_v42, -inf  ;;  %v1809_v43 = vld [vmem:[%s2109_s29 + $0x8] sm:$0xff]  }
 0x24b   : > { %893 = vmax.xlane.f32.xlu0 %v892_v44  ;;  %v889_v45 = vpop.f32.mrf.mxu1  ;;  %1684 = vmatpush3.bf16.msra.mxu1 %v1809_v43 }
 0x24c   : > { %v1810_v45 = vld [vmem:[%s2109_s29] sm:$0xff]   ;;  %1685 = vmatprep.subr.bf16.mxu1 %v1937_v2 }
 0x24d   : > { %v1664_v46 = vpop.f32.mrf.mxu1 }
 0x24f   : > { %v1002_v47 = vpop.f32.mrf.mxu1  ;;  %1686 = vmatpush3.bf16.msra.mxu1 %v1810_v45 }
 0x250   : > { %v1003_v48 = vadd.f32 %v1002_v47, %v612_v28  ;;  %1699 = vmatprep.subr.bf16.mxu1 %v1937_v2 }
 0x251   : > { %v1675_v49 = vpop.f32.mrf.mxu1 }
 0x252   : > { %v1008_v50 = vsel %vm617_vm3, %v1003_v48, -inf }
 0x253   : > { %v1005_v51 = vpop.f32.mrf.mxu1  ;;  %1009 = vmax.xlane.f32.xlu1 %v1008_v50 }
 0x255   : > { %v1676_v52 = vpop.f32.mrf.mxu1 }
 0x2c8   : > { %v666_v53 = vpop.xlane.xlu1 %665 }
 0x2c9   : > { %v667_v54 = vsub.f32 %v659_v30, %v666_v53 }
 0x2cb   : > { %v668_v55 = vmul.f32 1.442695, %v667_v54 }
 0x2cc   : > { %v778_v56 = vpop.xlane.xlu0 %777 }
 0x2cd   : > { %1821 = vpow2.f32 %v668_v55  ;;  %v779_v57 = vsub.f32 %v771_v35, %v778_v56 }
 0x2cf   : > { %v780_v58 = vmul.f32 1.442695, %v779_v57 }
 0x2d1   : > { %1823 = vpow2.f32 %v780_v58  ;;  %v1811_v58 = vld [vmem:[%s2118_s13 + $0x8] sm:$0xff]  }
 0x2d4   : > { %v894_v59 = vpop.xlane.xlu0 %893 }
 0x2d5   : > { %v895_v60 = vsub.f32 %v887_v42, %v894_v59  ;;  %v1812_v59 = vld [vmem:[%s2118_s13] sm:$0xff]  }
 0x2d7   : > { %v896_v61 = vmul.f32 1.442695, %v895_v60  ;;  %v1564_v60 = vld [vmem:[%s513_s21] ss:$0 sm:$0xff] }
 0x2d9   : > { %1825 = vpow2.f32 %v896_v61 }
 0x2da   : > { %v1822_v62 = vpop.eup %1821 }
 0x2db   : > { %v670_v63 = vsel %vm617_vm3, %v1822_v62, 0.0 }
 0x2dc   : > { %671 = vadd.xlane.f32.xlu0 %v670_v63  ;;  %v1010_v6 = vpop.xlane.xlu1 %1009 }
 0x2dd   : > { %v1011_v7 = vsub.f32 %v1003_v48, %v1010_v6  ;;  %v1813_v6 = vld [vmem:[%s2132_s3 + $0x38] sm:$0xff]  }
 0x2de   : > { %v1824_v0 = vpop.eup %1823 }
 0x2df   : > { %v782_v1 = vsel %vm617_vm3, %v1824_v0, 0.0  ;;  %v1012_v8 = vmul.f32 1.442695, %v1011_v7  ;;  %v1814_v7 = vld [vmem:[%s2132_s3 + $0x30] sm:$0xff]  }
 0x2e0   : > { %783 = vadd.xlane.f32.xlu1 %v782_v1 }
 0x2e1   : > { %1827 = vpow2.f32 %v1012_v8  ;;  %v1815_v8 = vld [vmem:[%s2132_s3 + $0x28] sm:$0xff]  }
 0x2e6   : > { %v1826_v3 = vpop.eup %1825 }
 0x2e7   : > { %v898_v5 = vsel %vm617_vm3, %v1826_v3, 0.0 }
 0x2e8   : > { %899 = vadd.xlane.f32.xlu0 %v898_v5 }
 0x2ee   : > { %v1828_v9 = vpop.eup %1827 }
 0x2ef   : > { %v1014_v11 = vsel %vm617_vm3, %v1828_v9, 0.0 }
 0x2f1   : > { %788 = vrot.lane.b32.xlu1 %v2156_v10, %s1947_s19 }
 0x2fe   : > { %676 = vrot.lane.b32.xlu0 %v2156_v10, %s1948_s30 }
 0x302   : > { %1020 = vrot.lane.b32.xlu0 %v2156_v10, %s1949_s24 }
 0x315   : > { %1015 = vadd.xlane.f32.xlu1 %v1014_v11  ;;  %v1818_v11 = vld [vmem:[%s2132_s3 + $0x10] sm:$0xff]  }
 0x326   : > { %904 = vrot.lane.b32.xlu1 %v2156_v10, %s1950_s1 }
 0x365   : > { %v672_v12 = vpop.xlane.xlu0 %671 }
 0x366   : > { %1829 = vrcp.f32 %v672_v12  ;;  %v1819_v12 = vld [vmem:[%s2132_s3 + $0x8] sm:$0xff]  }
 0x369   : > { %v784_v13 = vpop.xlane.xlu1 %783 }
 0x36a   : > { %1831 = vrcp.f32 %v784_v13  ;;  %v1820_v13 = vld [vmem:[%s2132_s3] sm:$0xff]  }
 0x36d   : > { %v789_v19 = vpop.permute.xlu1 %788 }
 0x36e   : > { %v794_v22 = vsel %vm681_vm5, %v789_v19, 0 }
 0x371   : > { %v900_v14 = vpop.xlane.xlu0 %899 }
 0x372   : > { %1833 = vrcp.f32 %v900_v14  ;;  %v1568_v14 = vld [vmem:[%s521_s0] ss:$0 sm:$0xff] }
 0x373   : > { %v1830_v15 = vpop.eup %1829 }
 0x374   : > { %v674_v16 = vmul.f32 %v1830_v15, %v1822_v62 }
 0x375   : > { %v677_v17 = vpop.permute.xlu0 %676 }
 0x376   : > { %v683_v18 = vsel %vm681_vm5, %v677_v17, 0  ;;  %v675_v20 = vpack.c.bf16 %v674_v16, %v674_v16 }
 0x377   : > { %1642 = vmatpush3.bf16.msra.mxu0 %v683_v18  ;;  %v1832_v21 = vpop.eup %1831 }
 0x378   : > { %1653 = vmatprep.subr.bf16.mxu0 %v1937_v2  ;;  %v786_v10 = vmul.f32 %v1832_v21, %v1824_v0 }
 0x379   : > { %v1021_v29 = vpop.permute.xlu0 %1020 }
 0x37a   : > { %1644 = vmatmul.mubr.msk.bf16.vlgmr.msra.gmra.mxu0 %vm617_vm3, %v675_v20  ;;  %v787_v23 = vpack.c.bf16 %v786_v10, %v786_v10  ;;  %v1026_v31 = vsel %vm681_vm5, %v1021_v29, 0 }
 0x37b   : > { %1654 = vmatpush3.bf16.msra.mxu0 %v794_v22  ;;  %1655 = vmatprep.mubr.msk.bf16.mxu0 %vm1938_vm1, %v1937_v2 }
 0x37c   : > { %1665 = vmatprep.subr.bf16.mxu0 %v1937_v2 }
 0x37f   : > { %v1834_v24 = vpop.eup %1833 }
 0x380   : > { %v902_v26 = vmul.f32 %v1834_v24, %v1826_v3  ;;  %v1573_v24 = vld [vmem:[%s529_s11] ss:$0 sm:$0xff] }
 0x382   : > { %1656 = vmatmul.mubr.msk.bf16.vlgmr.msra.gmra.mxu0 %vm617_vm3, %v787_v23  ;;  %v903_v30 = vpack.c.bf16 %v902_v26, %v902_v26 }
 0x383   : > { %1667 = vmatprep.mubr.msk.bf16.mxu0 %vm1938_vm1, %v1937_v2 }
 0x39e   : > { %v1016_v25 = vpop.xlane.xlu1 %1015 }
 0x39f   : > { %1835 = vrcp.f32 %v1016_v25 }
 0x3a2   : > { %v905_v27 = vpop.permute.xlu1 %904 }
 0x3a3   : > { %v910_v28 = vsel %vm681_vm5, %v905_v27, 0 }
 0x3a4   : > { %1666 = vmatpush3.bf16.msra.mxu0 %v910_v28 }
 0x3a5   : > { %1677 = vmatprep.subr.bf16.mxu0 %v1937_v2 }
 0x3a7   : > { %1668 = vmatmul.mubr.msk.bf16.vlgmr.msra.gmra.mxu0 %vm617_vm3, %v903_v30 }
 0x3a8   : > { %1678 = vmatpush3.bf16.msra.mxu0 %v1026_v31  ;;  %1679 = vmatprep.mubr.msk.bf16.mxu0 %vm1938_vm1, %v1937_v2 }
 0x3a9   : > { %1691 = vmatprep.subr.bf16.mxu0 %v1937_v2 }
 0x3ac   : > { %v1836_v32 = vpop.eup %1835 }
 0x3ad   : > { %v1018_v33 = vmul.f32 %v1836_v32, %v1828_v9  ;;  %v1817_v9 = vld [vmem:[%s2132_s3 + $0x18] sm:$0xff]  }
 0x3af   : > { %v1019_v34 = vpack.c.bf16 %v1018_v33, %v1018_v33 }
 0x3b1   : > { %1680 = vmatmul.mubr.msk.bf16.vlgmr.msra.gmra.mxu0 %vm617_vm3, %v1019_v34 }
 0x3b2   : > { %1695 = vmatprep.mubr.msk.bf16.mxu0 %vm1938_vm1, %v1937_v2  ;;  %1692 = vmatpush3.bf16.msra.mxu0 %v1811_v58 }
 0x3b3   : > { %1693 = vmatprep.subr.bf16.mxu0 %v1937_v2 }
 0x3b6   : > { %1694 = vmatpush3.bf16.msra.mxu0 %v1812_v59 }
 0x43a   : > { %v719_v35 = vpop.f32.mrf.mxu0 }
 0x43b   : > { %725 = vst.msk [vmem:[#allocation3] sm:$0xff] %vm617_vm3, %v719_v35 }
 0x43c   : > { %v1645_v36 = vpop.f32.mrf.mxu0 }
 0x43e   : > { %v722_v37 = vpop.f32.mrf.mxu0 }
 0x440   : > { %v1646_v38 = vpop.f32.mrf.mxu0 }
 0x442   : > { %v830_v39 = vpop.f32.mrf.mxu0 }
 0x443   : > { %837 = vrot.lane.b32.xlu1 %v830_v39, %s1951_s17 }
 0x444   : > { %v1657_v40 = vpop.f32.mrf.mxu0 }
 0x446   : > { %v833_v41 = vpop.f32.mrf.mxu0 }
 0x448   : > { %v1658_v42 = vpop.f32.mrf.mxu0 }
 0x467   : > { %v946_v44 = vpop.f32.mrf.mxu0 }
 0x468   : > { %953 = vrot.lane.b32.xlu0 %v946_v44, %s1952_s23 }
 0x469   : > { %v1669_v46 = vpop.f32.mrf.mxu0 }
 0x46b   : > { %v949_v47 = vpop.f32.mrf.mxu0 }
 0x46d   : > { %v1670_v48 = vpop.f32.mrf.mxu0 }
 0x471   : > { %v1062_v49 = vpop.f32.mrf.mxu0 }
 0x472   : > { %1069 = vrot.lane.b32.xlu1 %v1062_v49, %s1953_s27 }
 0x473   : > { %v1681_v50 = vpop.f32.mrf.mxu0 }
 0x475   : > { %v1065_v51 = vpop.f32.mrf.mxu0 }
 0x477   : > { %v1682_v52 = vpop.f32.mrf.mxu0 }
 0x4b5   : > { %v838_v53 = vpop.permute.xlu1 %837 }
 0x4b6   : > { %841 = vst.msk [vmem:[#allocation3] sm:$0xff] %vm840_vm6, %v838_v53 }
 0x4da   : > { %v954_v54 = vpop.permute.xlu0 %953 }
 0x4db   : > { %957 = vst.msk [vmem:[#allocation3] sm:$0xff] %vm956_vm7, %v954_v54 }
 0x4e4   : > { %v1070_v55 = vpop.permute.xlu1 %1069 }
 0x4e5   : > { %1073 = vst.msk [vmem:[#allocation3] sm:$0xff] %vm1072_vm8, %v1070_v55 }
 0x4ec   : > { %v1074_v56 = vld [vmem:[#allocation3] sm:$0xff] }
 0x4ed   : > { %v1075_v57 = vpack.c.bf16 %v1074_v56, %v1074_v56 }
 0x4ef   : > { %1688 = vmatmul.mubr.msk.bf16.vlgmr.msra.gmra.mxu1 %vm563_vm2, %v1075_v57 }
 0x4f0   : > { %1715 = vmatprep.mubr.msk.bf16.mxu1 %vm1938_vm1, %v1937_v2  ;;  %1700 = vmatpush3.bf16.msra.mxu1 %v1813_v6 }
 0x4f1   : > { %1701 = vmatprep.subr.bf16.mxu1 %v1937_v2 }
 0x4f4   : > { %1702 = vmatpush3.bf16.msra.mxu1 %v1814_v7 }
 0x4f5   : > { %1703 = vmatprep.subr.bf16.mxu1 %v1937_v2 }
 0x4f8   : > { %1704 = vmatpush3.bf16.msra.mxu1 %v1815_v8 }
 0x4f9   : > { %1705 = vmatprep.subr.bf16.mxu1 %v1937_v2 }
 0x5af   : > { %v1136_v61 = vpop.f32.mrf.mxu1 }
 0x5b0   : > { %v1137_v62 = vadd.f32 %v1564_v60, %v1136_v61 }
 0x5b1   : > { %v1689_v63 = vpop.f32.mrf.mxu1 }
 0x5b2   : > { %v1142_v0 = vadd.f32 %v1137_v62, %v2140_v4  ;;  %v1816_v4 = vld [vmem:[%s2132_s3 + $0x20] sm:$0xff]  }
 0x5b3   : > { %v1139_v1 = vpop.f32.mrf.mxu1  ;;  %1706 = vmatpush3.bf16.msra.mxu1 %v1816_v4 }
 0x5b4   : > { %v1143_v3 = vpack.c.bf16 %v1142_v0, %v1142_v0  ;;  %1707 = vmatprep.subr.bf16.mxu1 %v1937_v2 }
 0x5b5   : > { %v1690_v5 = vpop.f32.mrf.mxu1 }
 0x5b6   : > { %1696 = vmatmul.mubr.msk.bf16.vlgmr.msra.gmra.mxu0 %vm563_vm2, %v1143_v3 }
 0x5b7   : > { %1708 = vmatpush3.bf16.msra.mxu1 %v1817_v9 }
 0x5b8   : > { %1709 = vmatprep.subr.bf16.mxu1 %v1937_v2 }
 0x5bb   : > { %1710 = vmatpush3.bf16.msra.mxu1 %v1818_v11 }
 0x5bc   : > { %1711 = vmatprep.subr.bf16.mxu1 %v1937_v2 }
 0x5bf   : > { %1712 = vmatpush3.bf16.msra.mxu1 %v1819_v12 }
 0x5c0   : > { %1713 = vmatprep.subr.bf16.mxu1 %v1937_v2 }
 0x5c3   : > { %1714 = vmatpush3.bf16.msra.mxu1 %v1820_v13 }
 0x676   : > { %v1204_v15 = vpop.f32.mrf.mxu0 }
 0x677   : > { %v1205_v16 = vadd.f32 %v1568_v14, %v1204_v15 }
 0x678   : > { %v1697_v17 = vpop.f32.mrf.mxu0 }
 0x679   : > { %v1572_v18 = vmul.f32 -1.442695, %v1205_v16 }
 0x67a   : > { %v1207_v19 = vpop.f32.mrf.mxu0 }
 0x67b   : > { %1837 = vpow2.f32 %v1572_v18 }
 0x67c   : > { %v1698_v20 = vpop.f32.mrf.mxu0 }
 0x688   : > { %v1838_v21 = vpop.eup %1837 }
 0x689   : > { %v1213_v22 = vadd.f32 1.0, %v1838_v21 }
 0x68b   : > { %1839 = vrcp.f32 %v1213_v22 }
 0x698   : > { %v1840_v10 = vpop.eup %1839 }
 0x699   : > { %v1216_v2 = vmul.f32 %v1840_v10, %v1205_v16 }
 0x69b   : > { %v1217_v23 = vpack.c.bf16 %v1216_v2, %v1216_v2 }
 0x69d   : > { %1716 = vmatmul.mubr.bf16.vlgmr.msra.gmra.mxu1 %v1217_v23 }
 0x75d   : > { %v1323_v25 = vpop.f32.mrf.mxu1 }
 0x75e   : > { %v1324_v26 = vadd.f32 %v1573_v24, %v1323_v25 }
 0x75f   : > { %v1717_v27 = vpop.f32.mrf.mxu1  ;;  %1334 = sbr.rel (%p1582_p1) target bundleno = 2203 (0x89b), region = 72 }
 0x760   : > { %v1329_v28 = vadd.f32 %v1324_v26, %v1142_v0 }
 0x761   : > { %v1326_v29 = vpop.f32.mrf.mxu1 }
 0x762   : > { %1330 = vst.msk [vmem:[#allocation2] sm:$0xff] %vm563_vm2, %v1329_v28 }
 0x763   : > { %v1718_v30 = vpop.f32.mrf.mxu1 }
 0x764   : > { %v1335_v31 = vsel %vm563_vm2, %v1329_v28, 0.0  ;;  %v1583_v41 = vld [vmem:[%s2330_s9] ss:$0 sm:$0xff]  ;;  %vm1366_vm9 = vcmask 257024  }
 0x765   : > { %1336 = vadd.xlane.f32.xlu0 %v1335_v31  ;;  %v1584_v43 = vld [vmem:[%s2331_s10] ss:$0 sm:$0xff] }
 0x7ee   : > { %v1337_v32 = vpop.xlane.xlu0 %1336 }
 0x7ef   : > { %v1339_v33 = vmul.f32 0.03125, %v1337_v32 }
 0x7f1   : > { %v1340_v34 = vsub.f32 %v1329_v28, %v1339_v33 }
 0x7f3   : > { %v1341_v35 = vmul.f32 %v1340_v34, %v1340_v34 }
 0x7f5   : > { %v1342_v36 = vsel %vm563_vm2, %v1341_v35, 0.0 }
 0x7f6   : > { %1343 = vadd.xlane.f32.xlu0 %v1342_v36 }
 0x87f   : > { %v1344_v37 = vpop.xlane.xlu0 %1343 }
 0x880   : > { %v1345_v38 = vmul.f32 0.03125, %v1344_v37 }
 0x882   : > { %v1346_v39 = vadd.f32 1e-05, %v1345_v38 }
 0x884   : > { %1841 = vrsqrt.f32 %v1346_v39 }
 0x891   : > { %v1842_v40 = vpop.eup %1841 }
 0x892   : > { %v1348_v42 = vmul.f32 %v1842_v40, %v1340_v34 }
 0x894   : > { %v1356_v44 = vmul.f32 %v1583_v41, %v1348_v42 }
 0x896   : > { %v1364_v45 = vadd.f32 %v1584_v43, %v1356_v44 }
 0x898   : > { %v1365_v46 = vpack.c.bf16 %v1364_v45, %v1364_v45 }
 0x89a   : > { %1367 = vst.msk [vmem:[%s493_s18] sm:$0xf] %vm1366_vm9, %v1365_v46 }
 0x89b PF: > { %s2369_s28 = sld [smem:[#allocation10_spill]]  ;;  %s1382_s23 = sshll.u32 %s493_s18, 4  ;;  %s1383_s23 = int_to_ptr.vmem [resolvable:$true] %s1382_s23 }
 0x89c   : > { %s2370_s12 = sld [smem:[#allocation8_spill]]  ;;  %s1843_s14 = scalar_lea.vmem %s1383_s23, 64 }
 0x89d   : > { %s2372_s24 = sld [smem:[#allocation22_spill]]  ;;  %p1844_p2 = scmp.ne.s32.totalorder %s1383_s23, %s1843_s14 }
 0x89e   : > { %s1954_s21 = smov [#allocation4]  }
 0x89f   : > { %p1845_p4 = pnand %p1844_p2, %p2064_p3  ;;  %s1847_s13 = sshll.u32 %s1954_s21, 4  ;;  %s1848_s13 = int_to_ptr.vmem [resolvable:$false] %s1847_s13 }
 0x8a0   : > { %s1849_s3 = scalar_lea.vmem %s1848_s13, 128  ;;  %p1850_p6 = scmp.lt.s32.totalorder %s1383_s23, %s1848_s13 }
 0x8a1   : > { %s1586_s15 = sshll.u32 %s2369_s28, 6  ;;  %p1846_p5 = pneg %p1845_p4 }
 0x8a2   : > { %s2374_s27 = sand.u32 1, %s2370_s12   ;;  %p1851_p7 = scmp.lt.s32.totalorder %s1849_s3, %s1843_s14 }
 0x8a3   : > { %s2373_s1 = smov %s2372_s24  ;;  %s1380_s17 = scalar_lea.hbm %s2372_s24, %s1586_s15 }
 0x8a4   : > { %s1369_s29 = scalar_lea.sflag [#allocation5], %s2374_s27  ;;  %p1852_p8 = por %p1851_p7, %p1850_p6 }
 0x8a6   : > { %p1853_p10 = pnand %p1852_p8, %p1846_p5 }
 0x8a8   : > { %1856 = shalt.err (!%p1853_p10)
}
 0x8a9   : > { %s1857_s25 = scalar_lea.hbm %s1380_s17, 64  ;;  %s1861_s0 = scalar_lea.hbm %s2373_s1, 128 }
 0x8aa   : > { %p1858_p11 = scmp.ne.s32.totalorder %s1380_s17, %s1857_s25  ;;  %p1862_p0 = scmp.lt.s32.totalorder %s1380_s17, %s2373_s1 }
 0x8ab   : > { %p1863_p1 = scmp.lt.s32.totalorder %s1861_s0, %s1857_s25 }
 0x8ac   : > { %p1859_p12 = pnand %p1858_p11, %p2064_p3 }
 0x8ad   : > { %p1864_p2 = por %p1863_p1, %p1862_p0 }
 0x8ae   : > { %p1860_p13 = pneg %p1859_p12 }
 0x8b0   : > { %p1865_p4 = pnand %p1864_p2, %p1860_p13 }
 0x8b2   : > { %1868 = shalt.err (!%p1865_p4)
}
 0x8b3   : > { %1719 = dma.vmem_to_hbm [thread:$0]  (%p2064_p3), %s1383_s23, 64, %s1380_s17, %s1369_s29  }
 0x8b4 PF: > { %s2375_s11 = sld [smem:[#allocation13_spill]] }
 0x8b5   : > { %s2376_s28 = sld [smem:[#allocation7_spill]] }
 0x8ba   : > { %p1725_p5 = scmp.ge.s32.totalorder %s2375_s11, 2 }
 0x8bb   : > { %s1394_s15 = sand.u32 1, %s2376_s28  }
 0x8bc   : > { %p1722_p6 = pnand %p1725_p5, %p2074_p9  ;;  %s1395_s19 = scalar_lea.sflag [#allocation5], %s1394_s15 }
 0x8be   : > { %p1723_p7 = pneg %p1722_p6 }
 0x8c0   : > { %1902 = dma.done.wait (%p1723_p7), %s1395_s19, 64  }
 0x8c1   : > { %1904 = vsyncadd (%p1723_p7), %s1395_s19, 4294967232  ;;  %s24_s24 = sadd.s32 1, %s2375_s11   ;;  %s2378_s17 = sld [smem:[#allocation8_spill]] }
 0x8c2   : > { %p21_p8 = scmp.ge.s32.totalorder %s24_s24, 6   ;;  %s2379_s18 = sld [smem:[#allocation9_spill]] }
 0x8c3   : > { %s2380_s19 = sld [smem:[#allocation18_spill]] }
 0x8c4   : > { %s2381_s20 = sld [smem:[#allocation11_spill]]  ;;  %23 = sbr.rel (!%p21_p8) target bundleno = 10 (0xa), region = 131 }
 0x8c5   : > { %s2382_s21 = sld [smem:[#allocation12_spill]] }
 0x8c6   : > { %s2383_s22 = sld [smem:[#allocation14_spill]] }
 0x8c7   : > { %s2384_s23 = sld [smem:[#allocation16_spill]] }
 0x8c9   :  { %1400 = vsyncpa [#allocation5], 1 }
 0x8ca   :  { %1402 = vsyncpa [#allocation5 + $0x1], 1 }

</bundles_post_ra>
